<compile_context>
chip_gen: v6e
topology: v6e:2x2x1
jax: 0.10.0
libtpu: 0.0.40
codegen_flags: <defaults>
</compile_context>

<pallas_src>
import jax
import jax.numpy as jnp
from jax.experimental import pallas as pl
from jax.experimental.pallas import tpu as pltpu

EPS = 1e-8


def _round_up(x, m):
    return -(-x // m) * m


def _vmem_limit_bytes():
    # v7x has 64 MiB VMEM per TensorCore vs 128 MiB on v5e/v6e; pick ~3/4 of
    # the physical capacity, capped at 100 MiB.
    try:
        cap = int(getattr(pltpu.get_tpu_info(), "vmem_capacity_bytes"))
    except Exception:
        cap = 64 * 1024 * 1024          # conservative (v7x) fallback
    return min((cap * 3) // 4, 100 * 1024 * 1024)


def _gvp_kernel(s_ref, v_ref, wvc_ref, ws_s_ref, ws_n_ref, ws_b_ref,
                s_out_ref, v_out_ref):
    """One node-tile (T nodes on the lane axis) of the GVP forward.

    s_ref     : [si, T]       streamed (bf16/f32)
    s/v order : node axis is the LAST (lane) dim everywhere.
    v_ref     : [3, vi, T]    streamed (bf16/f32), spatial-3 axis outermost
    wvc_ref   : [h+vo, vi] f32 VMEM-resident (rows 0:h = wh^T, h: = (wh@wv)^T)
    ws_s_ref  : [so, si]   f32 VMEM-resident (ws rows acting on s, transposed)
    ws_n_ref  : [so, h]    f32 VMEM-resident (ws rows acting on vn, transposed)
    ws_b_ref  : [so, 1]    f32 VMEM-resident
    s_out_ref : [so, T]
    v_out_ref : [3, vo, T]
    """
    f32 = jnp.float32
    h = ws_n_ref.shape[1]

    wvc = wvc_ref[...]
    # One MXU pass per spatial component: [h+vo, vi] @ [vi, T] -> [h+vo, T].
    # vh (rows 0:h) and the pre-gate v_out (rows h:) come out of the same dot;
    # the split is a sublane/row slice at a multiple of 8 (free), not a lane
    # slice at a non-128 offset.
    hv = [jnp.dot(wvc, v_ref[c].astype(f32), preferred_element_type=f32)
          for c in range(3)]
    vh = [x[:h] for x in hv]          # 3 x [h, T]
    vg = [x[h:] for x in hv]          # 3 x [vo, T]

    # ||vh||_2 over the spatial-3 axis: pure VPU/EUP, f32, no strided reduce.
    vn = jnp.sqrt(jnp.maximum(
        vh[0] * vh[0] + vh[1] * vh[1] + vh[2] * vh[2], EPS))      # [h, T]

    # s = relu( ws_s @ s + ws_n @ vn + b )   (concat-free split matmul)
    s_lin = (jnp.dot(ws_s_ref[...], s_ref[...].astype(f32),
                     preferred_element_type=f32)
             + jnp.dot(ws_n_ref[...], vn, preferred_element_type=f32)
             + ws_b_ref[...])
    s_out_ref[...] = jax.nn.relu(s_lin).astype(s_out_ref.dtype)

    # v = v * sigmoid(||v||_2 over the 3-axis)  (vector_act=sigmoid, no gate)
    vnorm = jnp.sqrt(jnp.maximum(
        vg[0] * vg[0] + vg[1] * vg[1] + vg[2] * vg[2], EPS))      # [vo, T]
    gate = jax.nn.sigmoid(vnorm)
    for c in range(3):
        v_out_ref[c] = (vg[c] * gate).astype(v_out_ref.dtype)


def gvp_forward(s, v, params, *, tile_n=8192, stream_dtype=jnp.bfloat16):
    """GVP forward (default config).

    s: [N, si] f32, v: [N, vi, 3] f32.
    Returns (s_out [N, so], v_out [N, vo, 3]) in `stream_dtype`.
    """
    n, vi, _ = v.shape
    si = s.shape[1]
    wh_t, ws_w_t, ws_b, wv_t = params
    h = wh_t.shape[1]
    so = ws_w_t.shape[1]
    vo = wv_t.shape[1]

    # --- weight preprocessing (tiny, f32, folded by jit) ---------------------
    # Combined vector weight [wh | wh@wv], pre-transposed for the W @ X form.
    # NOTE: h+vo=32, vi=16 underfills the MXU; fine while HBM-bound.  If
    # feature dims grow / layers are fused, widen toward 128 (v5e) / 256.
    wvc_t = jnp.concatenate([wh_t, wh_t @ wv_t], axis=1).T        # [h+vo, vi]
    ws_s_t = ws_w_t[:si].T                                        # [so, si]
    ws_n_t = ws_w_t[si:].T                                        # [so, h]
    ws_b2 = ws_b.reshape(so, 1)

    # --- node-on-lanes layout glue -------------------------------------------
    # TODO(synk): in a fused model the producer/consumer should keep the
    # [feat, N] / [3, feat, N] layout end-to-end; here we transpose at the
    # boundary and let allow_input_fusion fold it into the operand reads.
    s_t = s.T.astype(stream_dtype)                                # [si, N]
    v_t = jnp.transpose(v, (2, 1, 0)).astype(stream_dtype)        # [3, vi, N]

    # --- tile the node (lane) axis -------------------------------------------
    n128 = _round_up(n, 128)
    tile = min(tile_n, n128)
    if n128 > 128 and tile == n128:
        # Split into >=2 grid steps so v7x's second TensorCore gets work.
        tile = _round_up(n128 // 2, 128)
    n_pad = _round_up(n, tile)
    if n_pad != n:
        s_t = jnp.pad(s_t, ((0, 0), (0, n_pad - n)))
        v_t = jnp.pad(v_t, ((0, 0), (0, 0), (0, n_pad - n)))
    grid = (n_pad // tile,)

    # Advisory cost estimate: lets XLA overlap neighbours with this call.
    itemsize = jnp.dtype(stream_dtype).itemsize
    io_bytes = itemsize * n_pad * (si + 3 * vi + so + 3 * vo)
    w_bytes = 4 * (wvc_t.size + ws_s_t.size + ws_n_t.size + ws_b2.size)
    cost = pl.CostEstimate(
        flops=int(n_pad * (6 * vi * (h + vo) + 2 * (si + h) * so
                           + 8 * (h + vo))),
        transcendentals=int(n_pad * (h + 2 * vo)),
        bytes_accessed=int(io_bytes + w_bytes))

    s_out_t, v_out_t = pl.pallas_call(
        _gvp_kernel,
        out_shape=(jax.ShapeDtypeStruct((so, n_pad), stream_dtype),
                   jax.ShapeDtypeStruct((3, vo, n_pad), stream_dtype)),
        grid=grid,
        in_specs=[
            pl.BlockSpec((si, tile), lambda i: (0, i)),           # s (streamed)
            pl.BlockSpec((3, vi, tile), lambda i: (0, 0, i)),     # v (streamed)
            pl.BlockSpec((h + vo, vi), lambda i: (0, 0)),         # resident
            pl.BlockSpec((so, si), lambda i: (0, 0)),             # resident
            pl.BlockSpec((so, h), lambda i: (0, 0)),              # resident
            pl.BlockSpec((so, 1), lambda i: (0, 0)),              # resident
        ],
        out_specs=(
            pl.BlockSpec((so, tile), lambda i: (0, i)),
            pl.BlockSpec((3, vo, tile), lambda i: (0, 0, i)),
        ),
        compiler_params=pltpu.CompilerParams(
            dimension_semantics=("parallel",),     # megacore sharding on v7x
            vmem_limit_bytes=_vmem_limit_bytes(),
            allow_input_fusion=[True, True, False, False, False, False],
        ),
        cost_estimate=cost,
    )(s_t, v_t, wvc_t, ws_s_t, ws_n_t, ws_b2)

    # --- back to the PyTorch convention (ideally consumed transposed) --------
    s_out = s_out_t[:, :n].T                                      # [N, so]
    v_out = jnp.transpose(v_out_t[:, :, :n], (2, 1, 0))           # [N, vo, 3]
    return s_out, v_out


def _reference(s, v, params):
    """Pure-JAX reference mirroring the PyTorch forward."""
    wh_t, ws_w_t, ws_b, wv_t = params
    vt = jnp.swapaxes(v, -1, -2)                     # [N, 3, vi]
    vh = vt @ wh_t                                   # [N, 3, h]
    vn = jnp.sqrt(jnp.maximum(jnp.sum(vh * vh, axis=-2), EPS))
    s_out = jnp.concatenate([s, vn], -1) @ ws_w_t + ws_b
    v_out = jnp.swapaxes(vh @ wv_t, -1, -2)          # [N, vo, 3]
    nrm = jnp.sqrt(jnp.maximum(jnp.sum(v_out * v_out, -1, keepdims=True), EPS))
    v_out = v_out * jax.nn.sigmoid(nrm)
    return jax.nn.relu(s_out), v_out


def init_params(key, si, vi, so, vo, h):
    """Deterministic synthetic init (uniform(-1/sqrt(fan_in), +1/sqrt(fan_in)))."""
    k1, k2, k3, k4 = jax.random.split(key, 4)

    def lin(k, fan_in, fan_out):
        b = 1.0 / jnp.sqrt(fan_in)
        return jax.random.uniform(k, (fan_in, fan_out), jnp.float32, -b, b)

    wh_t = lin(k1, vi, h)              # wh: Linear(vi, h, bias=False), pre-transposed
    ws_w_t = lin(k2, h + si, so)       # ws: Linear(h+si, so)
    ws_b = jax.random.uniform(k3, (so,), jnp.float32,
                              -1.0 / jnp.sqrt(h + si), 1.0 / jnp.sqrt(h + si))
    wv_t = lin(k4, h, vo)              # wv: Linear(h, vo, bias=False), pre-transposed
    return wh_t, ws_w_t, ws_b, wv_t


if __name__ == "__main__":
    # GVP(in_dims=(32, 16), out_dims=(32, 16)) -> h_dim = max(16, 16) = 16
    N, SI, VI, SO, VO = 8, 32, 16, 32, 16
    H = max(VI, VO)

    key = jax.random.PRNGKey(0)
    ks, kv, kp = jax.random.split(key, 3)
    s = jax.random.normal(ks, (N, SI), jnp.float32)
    v = jax.random.normal(kv, (N, VI, 3), jnp.float32)
    params = init_params(kp, SI, VI, SO, VO, H)

    # 1) f32 streaming: tight check against the PyTorch-equivalent reference.
    #    (tolerance 1e-4: the [wh | wh@wv] fusion reorders f32 accumulation)
    s32, v32 = gvp_forward(s, v, params, stream_dtype=jnp.float32)
    jax.block_until_ready((s32, v32))
    s_ref, v_ref = _reference(s, v, params)
    assert s32.shape == (N, SO) and v32.shape == (N, VO, 3)
    assert jnp.allclose(s32, s_ref, atol=1e-4, rtol=1e-4)
    assert jnp.allclose(v32, v_ref, atol=1e-4, rtol=1e-4)

    # 2) bf16 streaming (default fast path): compare against the reference run
    #    on the same bf16-quantized inputs; remaining delta is the bf16 output
    #    cast (weights / accumulation / norms stay f32 inside the kernel).
    sb, vb = gvp_forward(s, v, params)
    jax.block_until_ready((sb, vb))
    sq = s.astype(jnp.bfloat16).astype(jnp.float32)
    vq = v.astype(jnp.bfloat16).astype(jnp.float32)
    s_refq, v_refq = _reference(sq, vq, params)
    assert sb.shape == (N, SO) and vb.shape == (N, VO, 3)
    assert jnp.allclose(sb.astype(jnp.float32), s_refq, atol=3e-2, rtol=3e-2)
    assert jnp.allclose(vb.astype(jnp.float32), v_refq, atol=3e-2, rtol=3e-2)

    print("KERNEL_OK")
</pallas_src>

<mosaic_0001>
module attributes {stable_mosaic.version = 11 : i64} {
  func.func @_gvp_kernel(%arg0: i32, %arg1: memref<32x128xf32, #tpu.memory_space<vmem>>, %arg2: memref<3x16x128xf32, #tpu.memory_space<vmem>>, %arg3: memref<32x16xf32, #tpu.memory_space<vmem>>, %arg4: memref<32x32xf32, #tpu.memory_space<vmem>>, %arg5: memref<32x16xf32, #tpu.memory_space<vmem>>, %arg6: memref<32x1xf32, #tpu.memory_space<vmem>>, %arg7: memref<32x128xf32, #tpu.memory_space<vmem>>, %arg8: memref<3x16x128xf32, #tpu.memory_space<vmem>>) attributes {dimension_semantics = [#tpu.dimension_semantics<parallel>], iteration_bounds = array<i64: 1>, scalar_prefetch = 0 : i64, scratch_operands = 0 : i64, tpu.core_type = #tpu.core_type<tc>, window_params = [{transform_indices = @transform_0, window_bounds = array<i64: 32, 128>}, {transform_indices = @transform_1, window_bounds = array<i64: 3, 16, 128>}, {pipeline_mode = #tpu.pipeline_mode<synchronous>, transform_indices = @transform_2, window_bounds = array<i64: 32, 16>}, {pipeline_mode = #tpu.pipeline_mode<synchronous>, transform_indices = @transform_3, window_bounds = array<i64: 32, 32>}, {pipeline_mode = #tpu.pipeline_mode<synchronous>, transform_indices = @transform_4, window_bounds = array<i64: 32, 16>}, {pipeline_mode = #tpu.pipeline_mode<synchronous>, transform_indices = @transform_5, window_bounds = array<i64: 32, 1>}, {transform_indices = @transform_6, window_bounds = array<i64: 32, 128>}, {transform_indices = @transform_7, window_bounds = array<i64: 3, 16, 128>}]} {
    %c0 = arith.constant 0 : index
    %c0_0 = arith.constant 0 : index
    %0 = vector.load %arg3[%c0, %c0_0] : memref<32x16xf32, #tpu.memory_space<vmem>>, vector<32x16xf32>
    %c0_1 = arith.constant 0 : index
    %c0_2 = arith.constant 0 : index
    %c0_3 = arith.constant 0 : index
    %1 = vector.load %arg2[%c0_1, %c0_2, %c0_3] : memref<3x16x128xf32, #tpu.memory_space<vmem>>, vector<1x16x128xf32>
    %2 = vector.shape_cast %1 : vector<1x16x128xf32> to vector<16x128xf32>
    %cst = arith.constant dense<0.000000e+00> : vector<32x128xf32>
    %3 = tpu.matmul %0, %2, %cst {dimension_numbers = #tpu.dot_dimension_numbers<[1], [0], [0], [1], [0, 0, 1, 1], [], []>} : vector<32x16xf32>, vector<16x128xf32>, vector<32x128xf32> -> vector<32x128xf32>
    %c1 = arith.constant 1 : index
    %c0_4 = arith.constant 0 : index
    %c0_5 = arith.constant 0 : index
    %4 = vector.load %arg2[%c1, %c0_4, %c0_5] : memref<3x16x128xf32, #tpu.memory_space<vmem>>, vector<1x16x128xf32>
    %5 = vector.shape_cast %4 : vector<1x16x128xf32> to vector<16x128xf32>
    %cst_6 = arith.constant dense<0.000000e+00> : vector<32x128xf32>
    %6 = tpu.matmul %0, %5, %cst_6 {dimension_numbers = #tpu.dot_dimension_numbers<[1], [0], [0], [1], [0, 0, 1, 1], [], []>} : vector<32x16xf32>, vector<16x128xf32>, vector<32x128xf32> -> vector<32x128xf32>
    %c2 = arith.constant 2 : index
    %c0_7 = arith.constant 0 : index
    %c0_8 = arith.constant 0 : index
    %7 = vector.load %arg2[%c2, %c0_7, %c0_8] : memref<3x16x128xf32, #tpu.memory_space<vmem>>, vector<1x16x128xf32>
    %8 = vector.shape_cast %7 : vector<1x16x128xf32> to vector<16x128xf32>
    %cst_9 = arith.constant dense<0.000000e+00> : vector<32x128xf32>
    %9 = tpu.matmul %0, %8, %cst_9 {dimension_numbers = #tpu.dot_dimension_numbers<[1], [0], [0], [1], [0, 0, 1, 1], [], []>} : vector<32x16xf32>, vector<16x128xf32>, vector<32x128xf32> -> vector<32x128xf32>
    %10 = vector.extract_strided_slice %3 {offsets = [0, 0], sizes = [16, 128], strides = [1, 1]} : vector<32x128xf32> to vector<16x128xf32>
    %11 = vector.extract_strided_slice %6 {offsets = [0, 0], sizes = [16, 128], strides = [1, 1]} : vector<32x128xf32> to vector<16x128xf32>
    %12 = vector.extract_strided_slice %9 {offsets = [0, 0], sizes = [16, 128], strides = [1, 1]} : vector<32x128xf32> to vector<16x128xf32>
    %13 = vector.extract_strided_slice %3 {offsets = [16, 0], sizes = [16, 128], strides = [1, 1]} : vector<32x128xf32> to vector<16x128xf32>
    %14 = vector.extract_strided_slice %6 {offsets = [16, 0], sizes = [16, 128], strides = [1, 1]} : vector<32x128xf32> to vector<16x128xf32>
    %15 = vector.extract_strided_slice %9 {offsets = [16, 0], sizes = [16, 128], strides = [1, 1]} : vector<32x128xf32> to vector<16x128xf32>
    %16 = arith.mulf %10, %10 : vector<16x128xf32>
    %17 = arith.mulf %11, %11 : vector<16x128xf32>
    %18 = arith.addf %16, %17 : vector<16x128xf32>
    %19 = arith.mulf %12, %12 : vector<16x128xf32>
    %20 = arith.addf %18, %19 : vector<16x128xf32>
    %cst_10 = arith.constant 9.99999993E-9 : f32
    %21 = vector.broadcast %cst_10 : f32 to vector<16x128xf32>
    %22 = arith.maximumf %20, %21 : vector<16x128xf32>
    %23 = math.sqrt %22 : vector<16x128xf32>
    %c0_11 = arith.constant 0 : index
    %c0_12 = arith.constant 0 : index
    %24 = vector.load %arg4[%c0_11, %c0_12] : memref<32x32xf32, #tpu.memory_space<vmem>>, vector<32x32xf32>
    %c0_13 = arith.constant 0 : index
    %c0_14 = arith.constant 0 : index
    %25 = vector.load %arg1[%c0_13, %c0_14] : memref<32x128xf32, #tpu.memory_space<vmem>>, vector<32x128xf32>
    %cst_15 = arith.constant dense<0.000000e+00> : vector<32x128xf32>
    %26 = tpu.matmul %24, %25, %cst_15 {dimension_numbers = #tpu.dot_dimension_numbers<[1], [0], [0], [1], [0, 0, 1, 1], [], []>} : vector<32x32xf32>, vector<32x128xf32>, vector<32x128xf32> -> vector<32x128xf32>
    %c0_16 = arith.constant 0 : index
    %c0_17 = arith.constant 0 : index
    %27 = vector.load %arg5[%c0_16, %c0_17] : memref<32x16xf32, #tpu.memory_space<vmem>>, vector<32x16xf32>
    %cst_18 = arith.constant dense<0.000000e+00> : vector<32x128xf32>
    %28 = tpu.matmul %27, %23, %cst_18 {dimension_numbers = #tpu.dot_dimension_numbers<[1], [0], [0], [1], [0, 0, 1, 1], [], []>} : vector<32x16xf32>, vector<16x128xf32>, vector<32x128xf32> -> vector<32x128xf32>
    %29 = arith.addf %26, %28 : vector<32x128xf32>
    %c0_19 = arith.constant 0 : index
    %c0_20 = arith.constant 0 : index
    %30 = vector.load %arg6[%c0_19, %c0_20] : memref<32x1xf32, #tpu.memory_space<vmem>>, vector<32x1xf32>
    %31 = vector.broadcast %30 : vector<32x1xf32> to vector<32x128xf32>
    %32 = arith.addf %29, %31 : vector<32x128xf32>
    %cst_21 = arith.constant 0.000000e+00 : f32
    %33 = vector.broadcast %cst_21 : f32 to vector<32x128xf32>
    %34 = arith.maximumf %32, %33 : vector<32x128xf32>
    %c0_22 = arith.constant 0 : index
    %c0_23 = arith.constant 0 : index
    %35 = vector.load %arg7[%c0_22, %c0_23] : memref<32x128xf32, #tpu.memory_space<vmem>>, vector<32x128xf32>
    tpu.vector_store %arg7[%c0_22, %c0_23], %34 {strides = array<i32>} : memref<32x128xf32, #tpu.memory_space<vmem>>, vector<32x128xf32>,
    %36 = arith.mulf %13, %13 : vector<16x128xf32>
    %37 = arith.mulf %14, %14 : vector<16x128xf32>
    %38 = arith.addf %36, %37 : vector<16x128xf32>
    %39 = arith.mulf %15, %15 : vector<16x128xf32>
    %40 = arith.addf %38, %39 : vector<16x128xf32>
    %cst_24 = arith.constant 9.99999993E-9 : f32
    %41 = vector.broadcast %cst_24 : f32 to vector<16x128xf32>
    %42 = arith.maximumf %40, %41 : vector<16x128xf32>
    %43 = math.sqrt %42 : vector<16x128xf32>
    %44 = arith.negf %43 : vector<16x128xf32>
    %45 = math.exp %44 : vector<16x128xf32>
    %cst_25 = arith.constant 1.000000e+00 : f32
    %46 = vector.broadcast %cst_25 : f32 to vector<16x128xf32>
    %47 = arith.addf %46, %45 : vector<16x128xf32>
    %48 = arith.divf %46, %47 : vector<16x128xf32>
    %49 = arith.mulf %13, %48 : vector<16x128xf32>
    %c0_26 = arith.constant 0 : index
    %c0_27 = arith.constant 0 : index
    %c0_28 = arith.constant 0 : index
    %50 = vector.load %arg8[%c0_26, %c0_27, %c0_28] : memref<3x16x128xf32, #tpu.memory_space<vmem>>, vector<1x16x128xf32>
    %51 = vector.shape_cast %50 : vector<1x16x128xf32> to vector<16x128xf32>
    %52 = vector.shape_cast %49 : vector<16x128xf32> to vector<1x16x128xf32>
    tpu.vector_store %arg8[%c0_26, %c0_27, %c0_28], %52 {strides = array<i32>} : memref<3x16x128xf32, #tpu.memory_space<vmem>>, vector<1x16x128xf32>,
    %53 = arith.mulf %14, %48 : vector<16x128xf32>
    %c1_29 = arith.constant 1 : index
    %c0_30 = arith.constant 0 : index
    %c0_31 = arith.constant 0 : index
    %54 = vector.load %arg8[%c1_29, %c0_30, %c0_31] : memref<3x16x128xf32, #tpu.memory_space<vmem>>, vector<1x16x128xf32>
    %55 = vector.shape_cast %54 : vector<1x16x128xf32> to vector<16x128xf32>
    %56 = vector.shape_cast %53 : vector<16x128xf32> to vector<1x16x128xf32>
    tpu.vector_store %arg8[%c1_29, %c0_30, %c0_31], %56 {strides = array<i32>} : memref<3x16x128xf32, #tpu.memory_space<vmem>>, vector<1x16x128xf32>,
    %57 = arith.mulf %15, %48 : vector<16x128xf32>
    %c2_32 = arith.constant 2 : index
    %c0_33 = arith.constant 0 : index
    %c0_34 = arith.constant 0 : index
    %58 = vector.load %arg8[%c2_32, %c0_33, %c0_34] : memref<3x16x128xf32, #tpu.memory_space<vmem>>, vector<1x16x128xf32>
    %59 = vector.shape_cast %58 : vector<1x16x128xf32> to vector<16x128xf32>
    %60 = vector.shape_cast %57 : vector<16x128xf32> to vector<1x16x128xf32>
    tpu.vector_store %arg8[%c2_32, %c0_33, %c0_34], %60 {strides = array<i32>} : memref<3x16x128xf32, #tpu.memory_space<vmem>>, vector<1x16x128xf32>,
    return
  }
  func.func @transform_0(%arg0: i32) -> (i32, i32) {
    %c0_i32 = arith.constant 0 : i32
    %c0_i32_0 = arith.constant 0 : i32
    return %c0_i32, %arg0 : i32, i32
  }
  func.func @transform_1(%arg0: i32) -> (i32, i32, i32) {
    %c0_i32 = arith.constant 0 : i32
    %c0_i32_0 = arith.constant 0 : i32
    %c0_i32_1 = arith.constant 0 : i32
    return %c0_i32, %c0_i32_0, %arg0 : i32, i32, i32
  }
  func.func @transform_2(%arg0: i32) -> (i32, i32) {
    %c0_i32 = arith.constant 0 : i32
    %c0_i32_0 = arith.constant 0 : i32
    %c0_i32_1 = arith.constant 0 : i32
    return %c0_i32, %c0_i32_0 : i32, i32
  }
  func.func @transform_3(%arg0: i32) -> (i32, i32) {
    %c0_i32 = arith.constant 0 : i32
    %c0_i32_0 = arith.constant 0 : i32
    %c0_i32_1 = arith.constant 0 : i32
    return %c0_i32, %c0_i32_0 : i32, i32
  }
  func.func @transform_4(%arg0: i32) -> (i32, i32) {
    %c0_i32 = arith.constant 0 : i32
    %c0_i32_0 = arith.constant 0 : i32
    %c0_i32_1 = arith.constant 0 : i32
    return %c0_i32, %c0_i32_0 : i32, i32
  }
  func.func @transform_5(%arg0: i32) -> (i32, i32) {
    %c0_i32 = arith.constant 0 : i32
    %c0_i32_0 = arith.constant 0 : i32
    %c0_i32_1 = arith.constant 0 : i32
    return %c0_i32, %c0_i32_0 : i32, i32
  }
  func.func @transform_6(%arg0: i32) -> (i32, i32) {
    %c0_i32 = arith.constant 0 : i32
    %c0_i32_0 = arith.constant 0 : i32
    return %c0_i32, %arg0 : i32, i32
  }
  func.func @transform_7(%arg0: i32) -> (i32, i32, i32) {
    %c0_i32 = arith.constant 0 : i32
    %c0_i32_0 = arith.constant 0 : i32
    %c0_i32_1 = arith.constant 0 : i32
    return %c0_i32, %c0_i32_0, %arg0 : i32, i32, i32
  }
}

</mosaic_0001>

<bundles_post_ra>
// kernel: tpu_custom_call.1
= control target key start
LH: loop header
LB: loop body
LE: loop exit
PB: predicated region body
PF: predicated region fallthrough
CT: control target
= control target key end

     0   :  { %13 = vsyncpa [#allocation3], 0  ;;  %vm33_vm0 = vcmask 130048   ;;  %s1024_s0 = inlined_call_operand.vmem [shape: f32[32,128], index: 0, kind: input, shape index: {}]   ;;  %s1025_s1 = inlined_call_operand.vmem [shape: f32[3,16,128], index: 1, kind: input, shape index: {}]   ;;  %s1026_s2 = inlined_call_operand.vmem [shape: f32[32,16], index: 2, kind: input, shape index: {}]   ;;  %s1027_s3 = inlined_call_operand.vmem [shape: f32[32,32], index: 3, kind: input, shape index: {}]   ;;  %s1028_s4 = inlined_call_operand.vmem [shape: f32[32,16], index: 4, kind: input, shape index: {}]   ;;  %s1029_s5 = inlined_call_operand.vmem [shape: f32[32,1], index: 5, kind: input, shape index: {}]   ;;  %s1030_s6 = inlined_call_operand.hbm [shape: f32[32,128], index: 6, kind: output, shape index: {0}]   ;;  %s1031_s7 = inlined_call_operand.hbm [shape: f32[3,16,128], index: 7, kind: output, shape index: {1}]  }
   0x1   :  { %v32_v0 = vld [vmem:[%s1025_s1 + $0x8] sm:$0xff]  ;;  %v31_v1 = vld [vmem:[%s1025_s1] sm:$0xff]  ;;  %v29_v3 = vld [vmem:[%s1026_s2 + $0x10] sm:$0xff] }
   0x2   :  { %718 = vmatprep.subr.mxu0 %v32_v0  ;;  %772 = vmatprep.subr.mxu1 %v32_v0  ;;  %v27_v2 = vld [vmem:[%s1026_s2] sm:$0xff]  ;;  %v28_v4 = vld [vmem:[%s1026_s2 + $0x8] sm:$0xff]  ;;  %v30_v5 = vld [vmem:[%s1026_s2 + $0x18] sm:$0xff] }
   0x3   :  { %719 = vmatpush3.msra.mxu0 %v32_v0  ;;  %774 = vmatpush3.msra.mxu1 %v32_v0 }
   0x4   :  { %720 = vmatprep.subr.mxu0 %v31_v1  ;;  %773 = vmatprep.subr.mxu1 %v31_v1 }
   0x5   :  { %14 = vsyncpa [#allocation5], 0  ;;  %721 = vmatpush3.msra.mxu0 %v31_v1  ;;  %775 = vmatpush3.msra.mxu1 %v31_v1  ;;  %v665_v6 = vld [vmem:[%s1025_s1 + $0x18] sm:$0xff]  ;;  %v671_v7 = vld [vmem:[%s1025_s1 + $0x28] sm:$0xff]  ;;  %vm442_vm1 = vcmask 261120   ;;  %v843_v21 = vmov 0  }
   0x6   :  { %722 = vmatprep.mubr.msk.f32.mxu0 %vm33_vm0, %v27_v2  ;;  %725 = vmatprep.mubr.msk.f32.mxu1 %vm33_vm0, %v29_v3  ;;  %v664_v8 = vld [vmem:[%s1025_s1 + $0x10] sm:$0xff]  ;;  %v670_v9 = vld [vmem:[%s1025_s1 + $0x20] sm:$0xff]  ;;  %v340_v10 = vld [vmem:[%s1024_s0 + $0x18] sm:$0xff] }
   0x7   :  { %723 = vmatmul.mubr.msk.f32.vlgmr.msra.gmra.mxu0 %vm33_vm0, %v28_v4  ;;  %726 = vmatmul.mubr.msk.f32.vlgmr.msra.gmra.mxu1 %vm33_vm0, %v30_v5  ;;  %v339_v11 = vld [vmem:[%s1024_s0 + $0x10] sm:$0xff]  ;;  %v338_v12 = vld [vmem:[%s1024_s0 + $0x8] sm:$0xff]  ;;  %v337_v13 = vld [vmem:[%s1024_s0] sm:$0xff] }
   0x8   :  { %728 = vmatprep.subr.mxu1 %v665_v6  ;;  %738 = vmatprep.subr.mxu0 %v671_v7  ;;  %v333_v14 = vld [vmem:[%s1027_s3] sm:$0xff]  ;;  %v334_v15 = vld [vmem:[%s1027_s3 + $0x8] sm:$0xff]  ;;  %v335_v17 = vld [vmem:[%s1027_s3 + $0x10] sm:$0xff] }
   0x9   :  { %729 = vmatpush3.msra.mxu1 %v665_v6  ;;  %739 = vmatpush3.msra.mxu0 %v671_v7  ;;  %v341_v16 = vld [vmem:[%s1028_s4] sm:$0xff]  ;;  %v336_v18 = vld [vmem:[%s1027_s3 + $0x18] sm:$0xff]  ;;  %v542_v20 = vld [vmem:[%s1029_s5 + $0x10] sm:$0xff] }
   0xa   :  { %730 = vmatprep.subr.mxu1 %v664_v8  ;;  %740 = vmatprep.subr.mxu0 %v670_v9  ;;  %v540_v19 = vld [vmem:[%s1029_s5] sm:$0xff]  ;;  %v541_v22 = vld [vmem:[%s1029_s5 + $0x8] sm:$0xff]  ;;  %v543_v23 = vld [vmem:[%s1029_s5 + $0x18] sm:$0xff] }
   0xb   :  { %731 = vmatpush3.msra.mxu1 %v664_v8  ;;  %732 = vmatprep.mubr.msk.f32.mxu1 %vm33_vm0, %v27_v2 }
   0xc   :  { %741 = vmatpush3.msra.mxu0 %v670_v9  ;;  %742 = vmatprep.mubr.msk.f32.mxu0 %vm33_vm0, %v27_v2  ;;  %v342_v9 = vld [vmem:[%s1028_s4 + $0x8] sm:$0xff] }
   0xd   :  { %733 = vmatmul.mubr.msk.f32.vlgmr.msra.gmra.mxu1 %vm33_vm0, %v28_v4  ;;  %743 = vmatmul.mubr.msk.f32.vlgmr.msra.gmra.mxu0 %vm33_vm0, %v28_v4 }
   0xe   :  { %735 = vmatprep.mubr.msk.f32.mxu1 %vm33_vm0, %v29_v3  ;;  %745 = vmatprep.mubr.msk.f32.mxu0 %vm33_vm0, %v29_v3 }
   0xf   :  { %758 = vmatprep.subr.mxu0 %v340_v10  ;;  %781 = vset.pattern.permute.xlu0 %v843_v21 }
  0x10   :  { %759 = vmatpush3.msra.mxu0 %v340_v10  ;;  %782 = vset.pattern.permute.xlu1 %v843_v21 }
  0x11   :  { %736 = vmatmul.mubr.msk.f32.gmra.mxu1 %vm33_vm0, %v30_v5  ;;  %746 = vmatmul.mubr.msk.f32.gmra.mxu0 %vm33_vm0, %v30_v5 }
  0x12   :  { %760 = vmatprep.subr.mxu0 %v339_v11  ;;  %766 = vmatprep.mubr.msk.f32.mxu0 %vm442_vm1, %v333_v14 }
  0x13   :  { %761 = vmatpush3.msra.mxu0 %v339_v11  ;;  %752 = vmatprep.mubr.msk.f32.mxu1 %vm33_vm0, %v341_v16 }
  0x14   :  { %762 = vmatprep.subr.mxu0 %v338_v12  ;;  %546 = vperm.xlu0 %781, %v540_v19  }
  0x15   :  { %763 = vmatpush3.msra.mxu0 %v338_v12  ;;  %556 = vperm.xlu1 %782, %v542_v20   ;;  %v343_v12 = vld [vmem:[%s1028_s4 + $0x10] sm:$0xff] }
  0x16   :  { %764 = vmatprep.subr.mxu0 %v337_v13 }
  0x17   :  { %765 = vmatpush3.msra.mxu0 %v337_v13 }
  0x18   :  { %767 = vmatmul.mubr.msk.f32.vlgmr.msra.gmra.mxu0 %vm442_vm1, %v334_v15  ;;  %551 = vperm.xlu0 %781, %v541_v22  }
  0x19   :  { %769 = vmatprep.mubr.msk.f32.mxu0 %vm442_vm1, %v335_v17  ;;  %561 = vperm.xlu1 %782, %v543_v23  }
  0x1c   :  { %770 = vmatmul.mubr.msk.f32.gmra.mxu0 %vm442_vm1, %v336_v18  ;;  %v344_v18 = vld [vmem:[%s1028_s4 + $0x18] sm:$0xff]  ;;  %s844_s4 = smov [#allocation4]  }
  0x1d   :  { %s645_s23 = sshll.u32 %s844_s4, 4  ;;  %s646_s23 = int_to_ptr.vmem [resolvable:$true] %s645_s23 }
  0x1e   :  { %s799_s24 = scalar_lea.vmem %s646_s23, 768  ;;  %p804_p1 = scmp.lt.s32.totalorder %s646_s23, %s646_s23 }
  0x1f   :  { %p800_p0 = scmp.ne.s32.totalorder %s646_s23, %s799_s24  ;;  %p805_p2 = scmp.lt.s32.totalorder %s799_s24, %s799_s24 }
  0x21   :  { %p806_p3 = por %p805_p2, %p804_p1 }
  0x23   :  { %p807_p4 = pnand %p806_p3, %p800_p0 }
  0xc7   :  { %v724_v24 = vpop.f32.mrf.mxu0  ;;  %v970_v25 = vpop.f32.mrf.mxu1 }
  0xc8   :  { %v308_v30 = vmul.f32 %v724_v24, %v724_v24  ;;  %v577_v38 = vmul.f32 %v970_v25, %v970_v25 }
  0xc9   :  { %v112_v26 = vpop.f32.mrf.mxu0  ;;  %v972_v27 = vpop.f32.mrf.mxu1 }
  0xca   :  { %v307_v35 = vmul.f32 %v112_v26, %v112_v26  ;;  %v576_v46 = vmul.f32 %v972_v27, %v972_v27 }
  0xcd   :  { %v734_v28 = vpop.f32.mrf.mxu1  ;;  %v744_v29 = vpop.f32.mrf.mxu0 }
  0xce   :  { %v310_v31 = vmul.f32 %v734_v28, %v734_v28  ;;  %v314_v32 = vmul.f32 %v744_v29, %v744_v29 }
  0xcf   :  { %v200_v33 = vpop.f32.mrf.mxu1  ;;  %v288_v34 = vpop.f32.mrf.mxu0 }
  0xd0   :  { %v312_v36 = vadd.f32 %v310_v31, %v308_v30  ;;  %v309_v37 = vmul.f32 %v200_v33, %v200_v33  ;;  %v313_v39 = vmul.f32 %v288_v34, %v288_v34 }
  0xd1   :  { %v976_v40 = vpop.f32.mrf.mxu1  ;;  %v978_v41 = vpop.f32.mrf.mxu0 }
  0xd2   :  { %v316_v42 = vadd.f32 %v314_v32, %v312_v36  ;;  %v311_v43 = vadd.f32 %v309_v37, %v307_v35  ;;  %v579_v44 = vmul.f32 %v976_v40, %v976_v40  ;;  %v583_v45 = vmul.f32 %v978_v41, %v978_v41 }
  0xd3   :  { %v986_v47 = vpop.f32.mrf.mxu1  ;;  %v988_v48 = vpop.f32.mrf.mxu0 }
  0xd4   :  { %v318_v49 = vmax.f32 %v316_v42, 1e-08  ;;  %v315_v50 = vadd.f32 %v313_v39, %v311_v43  ;;  %v581_v51 = vadd.f32 %v579_v44, %v577_v38  ;;  %v578_v52 = vmul.f32 %v986_v47, %v986_v47 }
  0xd5   :  { %v582_v53 = vmul.f32 %v988_v48, %v988_v48 }
  0xd6   :  { %783 = vrsqrt.f32 %v318_v49  ;;  %v317_v54 = vmax.f32 %v315_v50, 1e-08  ;;  %v580_v55 = vadd.f32 %v578_v52, %v576_v46  ;;  %v585_v56 = vadd.f32 %v583_v45, %v581_v51 }
  0xd7   :  { %vm328_vm2 = vcmp.eq.f32.partialorder %v318_v49, inf  ;;  %v331_v63 = vand.u32 2147483648, %v318_v49  ;;  %vm330_vm3 = vcmp.eq.f32.partialorder %v318_v49, 0.0 }
  0xd8   :  { %785 = vrsqrt.f32 %v317_v54  ;;  %v587_v57 = vmax.f32 %v585_v56, 1e-08  ;;  %v584_v58 = vadd.f32 %v582_v53, %v580_v55  ;;  %vm321_vm4 = vcmp.eq.f32.partialorder %v317_v54, inf }
  0xd9   :  { %v324_v4 = vand.u32 2147483648, %v317_v54  ;;  %vm323_vm5 = vcmp.eq.f32.partialorder %v317_v54, 0.0 }
  0xda   :  { %787 = vrsqrt.f32 %v587_v57  ;;  %v586_v59 = vmax.f32 %v584_v58, 1e-08  ;;  %vm597_vm6 = vcmp.eq.f32.partialorder %v587_v57, inf  ;;  %v600_v7 = vand.u32 2147483648, %v587_v57 }
  0xdb   :  { %vm599_vm7 = vcmp.eq.f32.partialorder %v587_v57, 0.0 }
  0xdc   :  { %789 = vrsqrt.f32 %v586_v59  ;;  %vm590_vm8 = vcmp.eq.f32.partialorder %v586_v59, inf  ;;  %v593_v16 = vand.u32 2147483648, %v586_v59  ;;  %vm592_vm9 = vcmp.eq.f32.partialorder %v586_v59, 0.0 }
  0xe3   :  { %v784_v60 = vpop.eup %783 }
  0xe4   :  { %v327_v61 = vmul.f32 %v784_v60, %v318_v49 }
  0xe5   :  { %v786_v62 = vpop.eup %785 }
  0xe6   :  { %v329_v0 = vsel %vm328_vm2, %v318_v49, %v327_v61  ;;  %v320_v1 = vmul.f32 %v786_v62, %v317_v54 }
  0xe7   :  { %v788_v2 = vpop.eup %787  ;;  %v332_v3 = vsel %vm330_vm3, %v331_v63, %v329_v0 }
  0xe8   :  { %v596_v5 = vmul.f32 %v788_v2, %v587_v57  ;;  %748 = vmatprep.subr.mxu1 %v332_v3  ;;  %v322_v6 = vsel %vm321_vm4, %v317_v54, %v320_v1 }
  0xe9   :  { %749 = vmatpush3.msra.mxu1 %v332_v3  ;;  %v325_v8 = vsel %vm323_vm5, %v324_v4, %v322_v6  ;;  %v790_v10 = vpop.eup %789 }
  0xea   :  { %v598_v11 = vsel %vm597_vm6, %v587_v57, %v596_v5  ;;  %750 = vmatprep.subr.mxu1 %v325_v8  ;;  %v589_v14 = vmul.f32 %v790_v10, %v586_v59 }
  0xeb   :  { %v601_v13 = vsel %vm599_vm7, %v600_v7, %v598_v11  ;;  %751 = vmatpush3.msra.mxu1 %v325_v8 }
  0xec   :  { %v685_v15 = vmul.f32 -1.442695, %v601_v13  ;;  %753 = vmatmul.mubr.msk.f32.vlgmr.msra.gmra.mxu1 %vm33_vm0, %v342_v9  ;;  %v591_v17 = vsel %vm590_vm8, %v586_v59, %v589_v14 }
  0xed   :  { %755 = vmatprep.mubr.msk.f32.mxu1 %vm33_vm0, %v343_v12  ;;  %v594_v19 = vsel %vm592_vm9, %v593_v16, %v591_v17 }
  0xee   :  { %791 = vpow2.f32 %v685_v15  ;;  %v684_v20 = vmul.f32 -1.442695, %v594_v19 }
  0xf0   :  { %756 = vmatmul.mubr.msk.f32.gmra.mxu1 %vm33_vm0, %v344_v18  ;;  %793 = vpow2.f32 %v684_v20 }
  0xfb   :  { %v792_v21 = vpop.eup %791 }
  0xfc   :  { %v609_v22 = vadd.f32 1.0, %v792_v21 }
  0xfd   :  { %v794_v23 = vpop.eup %793 }
  0xfe   :  { %795 = vrcp.f32 %v609_v22  ;;  %v608_v24 = vadd.f32 1.0, %v794_v23 }
 0x100   :  { %797 = vrcp.f32 %v608_v24 }
 0x10b   :  { %v796_v26 = vpop.eup %795 }
 0x10c   :  { %v624_v28 = vmul.f32 %v796_v26, %v978_v41  ;;  %v615_v29 = vmul.f32 %v796_v26, %v970_v25  ;;  %v619_v30 = vmul.f32 %v796_v26, %v976_v40 }
 0x10d   :  { %v798_v31 = vpop.eup %797 }
 0x10e   :  { %627 = vst [vmem:[#allocation4 + $0x28] sm:$0xff] %v624_v28  ;;  %617 = vst [vmem:[#allocation4 + $0x8] sm:$0xff] %v615_v29  ;;  %v623_v32 = vmul.f32 %v798_v31, %v988_v48  ;;  %v614_v33 = vmul.f32 %v798_v31, %v972_v27  ;;  %v618_v34 = vmul.f32 %v798_v31, %v986_v47 }
 0x10f   :  { %622 = vst [vmem:[#allocation4 + $0x18] sm:$0xff] %v619_v30 }
 0x110   :  { %626 = vst [vmem:[#allocation4 + $0x20] sm:$0xff] %v623_v32  ;;  %616 = vst [vmem:[#allocation4] sm:$0xff] %v614_v33 }
 0x111   :  { %621 = vst [vmem:[#allocation4 + $0x10] sm:$0xff] %v618_v34 }
 0x112   :  { %810 = shalt.err (!%p807_p4)
}
 0x113   :  { %s845_s25 = smov 128   ;;  %s846_s26 = smov 8   ;;  %v768_v25 = vpop.f32.mrf.mxu0  ;;  %v547_v27 = vpop.permute.xlu0 %546 }
 0x114   :  { %651 = dma.vmem_to_hbm [thread:$0]  %s646_s23, 768, %s1031_s7, [#allocation5], %s845_s25, %s845_s25, %s846_s26   ;;  %v557_v36 = vpop.permute.xlu1 %556 }
 0x115   :  { %v521_v35 = vpop.f32.mrf.mxu0  ;;  %s847_s7 = smov [#allocation2]  }
 0x116   :  { %s633_s29 = sshll.u32 %s847_s7, 4  ;;  %s634_s29 = int_to_ptr.vmem [resolvable:$true] %s633_s29 }
 0x117   :  { %v552_v38 = vpop.permute.xlu0 %551  ;;  %v771_v40 = vpop.f32.mrf.mxu0  ;;  %s819_s30 = scalar_lea.vmem %s634_s29, 512  ;;  %p824_p6 = scmp.lt.s32.totalorder %s634_s29, %s634_s29 }
 0x118   :  { %v562_v50 = vpop.permute.xlu1 %561  ;;  %p820_p5 = scmp.ne.s32.totalorder %s634_s29, %s819_s30  ;;  %p825_p7 = scmp.lt.s32.totalorder %s819_s30, %s819_s30 }
 0x119   :  { %v531_v48 = vpop.f32.mrf.mxu0 }
 0x11a   :  { %p826_p8 = por %p825_p7, %p824_p6 }
 0x11c   :  { %p827_p9 = pnand %p826_p8, %p820_p5 }
 0x1ac   :  { %v754_v37 = vpop.f32.mrf.mxu1 }
 0x1ad   :  { %v527_v39 = vadd.f32 %v768_v25, %v754_v37 }
 0x1ae   :  { %v423_v41 = vpop.f32.mrf.mxu1 }
 0x1af   :  { %v522_v42 = vadd.f32 %v521_v35, %v423_v41  ;;  %v565_v43 = vadd.f32 %v552_v38, %v527_v39 }
 0x1b0   :  { %v757_v44 = vpop.f32.mrf.mxu1 }
 0x1b1   :  { %v564_v45 = vadd.f32 %v547_v27, %v522_v42  ;;  %v537_v46 = vadd.f32 %v771_v40, %v757_v44  ;;  %v569_v47 = vmax.f32 %v565_v43, 0.0 }
 0x1b2   :  { %v433_v49 = vpop.f32.mrf.mxu1 }
 0x1b3   :  { %v568_v51 = vmax.f32 %v564_v45, 0.0  ;;  %573 = vst [vmem:[#allocation2 + $0x8] sm:$0xff] %v569_v47  ;;  %v532_v52 = vadd.f32 %v531_v48, %v433_v49  ;;  %v567_v53 = vadd.f32 %v562_v50, %v537_v46 }
 0x1b5   :  { %572 = vst [vmem:[#allocation2] sm:$0xff] %v568_v51  ;;  %v566_v54 = vadd.f32 %v557_v36, %v532_v52  ;;  %v571_v55 = vmax.f32 %v567_v53, 0.0 }
 0x1b7   :  { %v570_v56 = vmax.f32 %v566_v54, 0.0  ;;  %575 = vst [vmem:[#allocation2 + $0x18] sm:$0xff] %v571_v55 }
 0x1b9   :  { %574 = vst [vmem:[#allocation2 + $0x10] sm:$0xff] %v570_v56 }
 0x1ba   :  { %830 = shalt.err (!%p827_p9)
}
 0x1bb   :  { %639 = dma.vmem_to_hbm [thread:$0]  %s634_s29, 512, %s1030_s6, [#allocation3], %s845_s25, %s845_s25, %s846_s26  }
 0x1bc   :  { %839 = dma.done.wait [#allocation3], 512  }
 0x1bd   :  { %840 = vsyncadd [#allocation3], 4294966784 }
 0x1be   :  { %841 = dma.done.wait [#allocation5], 768  }
 0x1bf   :  { %842 = vsyncadd [#allocation5], 4294966528 }
 0x1c0   :  { %658 = vsyncpa [#allocation3], 1 }
 0x1c1   :  { %659 = vsyncpa [#allocation5], 1 }

</bundles_post_ra>
